<compile_context>
chip_gen: v7x
topology: tpu7x:2x2x1
jax: 0.10.0
libtpu: 0.0.40
codegen_flags: <defaults>
</compile_context>

<pallas_src>
import jax
import jax.numpy as jnp
from jax.experimental import pallas as pl
from jax.experimental.pallas import tpu as pltpu


# --------------------------------------------------------------------------
# Parameter preprocessing (run ONCE at setup time, not per forward call).
# --------------------------------------------------------------------------
def prepare_zlayer_params(weight, bias):
    """Split torch nn.Linear(D+1, 1) params into kernel-friendly form.

    Args:
      weight: (1, D+1) float32  -- torch nn.Linear weight layout
      bias:   (1,)     float32
    Returns:
      w_x: (1, D) float32  lane-dense row of x-weights (VPU friendly)
      wzb: (2,)   float32  [w_z, bias] scalars (SMEM)
    """
    D = weight.shape[1] - 1
    w_x = weight[:, :D].astype(jnp.float32)                        # (1, D)
    wzb = jnp.stack([weight[0, D], bias[0]]).astype(jnp.float32)   # (2,)
    return w_x, wzb


def _row_block(n_rows, n_cols, target_rows=1024, budget_bytes=8 * 1024 * 1024):
    """Pick a row-block size: large enough for the HBM-roofline regime
    (>=512 rows when possible), small enough that a double-buffered
    (rows, n_cols) f32 block stays under ~8 MiB -> fits the default scoped
    VMEM on every generation (v5e 16 MiB floor; v7x physical VMEM is 64 MiB,
    so we deliberately leave headroom)."""
    cap = max(8, budget_bytes // (2 * n_cols * 4))
    tr = min(target_rows, cap)
    if n_rows <= tr:
        return n_rows                      # one block == full extent (always legal)
    return max(8, (tr // 8) * 8)           # sublane-aligned; ragged edge masked by Pallas


# --------------------------------------------------------------------------
# Single-step kernel (exact ZlayerCell.forward), row-tiled over the batch.
# --------------------------------------------------------------------------
def _zlayer_cell_kernel(x_ref, z_ref, wx_ref, wzb_ref, o_ref):
    # x_ref : VMEM (TB, D), z_ref : VMEM (TB, 1)
    # wx_ref: VMEM (1, D) resident, wzb_ref: SMEM (2,) = [w_z, bias]
    # VPU multiply + XLU lane reduce (no MXU matvec).
    lin = jnp.sum(x_ref[...] * wx_ref[...], axis=-1, keepdims=True)  # (TB, 1)
    lin = lin + z_ref[...] * wzb_ref[0] + wzb_ref[1]
    o_ref[...] = jax.nn.sigmoid(lin).astype(o_ref.dtype)


def zlayer_cell(x_t, z_tm1, w_x, wzb):
    """Single-step ZlayerCell forward. Params must come from prepare_zlayer_params."""
    B, D = x_t.shape
    TB = _row_block(B, D)
    return pl.pallas_call(
        _zlayer_cell_kernel,
        out_shape=jax.ShapeDtypeStruct((B, 1), jnp.float32),
        grid=(pl.cdiv(B, TB),),
        in_specs=[
            pl.BlockSpec((TB, D), lambda i: (i, 0)),             # x tile
            pl.BlockSpec((TB, 1), lambda i: (i, 0)),             # z tile
            pl.BlockSpec((1, D), lambda i: (0, 0)),              # w_x resident
            pl.BlockSpec(memory_space=pltpu.MemorySpace.SMEM),   # wzb scalars
        ],
        out_specs=pl.BlockSpec((TB, 1), lambda i: (i, 0)),
        compiler_params=pltpu.CompilerParams(
            dimension_semantics=("parallel",)),
    )(x_t, z_tm1, w_x, wzb)


# --------------------------------------------------------------------------
# Pass A: z-independent projection  lin[n] = sum_d x[n, d] * w_x[d] + bias
# Fully parallel over row blocks of the flattened (T*B, D) sequence.
# --------------------------------------------------------------------------
def _project_kernel(x_ref, wx_ref, wzb_ref, o_ref):
    # x_ref: VMEM (TR, D), wx_ref: VMEM (1, D), wzb_ref: SMEM (2,)
    lin = jnp.sum(x_ref[...] * wx_ref[...], axis=-1, keepdims=True)  # (TR, 1)
    o_ref[...] = lin + wzb_ref[1]


def _project(x_flat, w_x, wzb):
    N, D = x_flat.shape
    TR = _row_block(N, D)
    return pl.pallas_call(
        _project_kernel,
        out_shape=jax.ShapeDtypeStruct((N, 1), jnp.float32),
        grid=(pl.cdiv(N, TR),),
        in_specs=[
            pl.BlockSpec((TR, D), lambda i: (i, 0)),             # big contiguous x tile
            pl.BlockSpec((1, D), lambda i: (0, 0)),              # w_x resident
            pl.BlockSpec(memory_space=pltpu.MemorySpace.SMEM),   # [w_z, bias]
        ],
        out_specs=pl.BlockSpec((TR, 1), lambda i: (i, 0)),
        compiler_params=pltpu.CompilerParams(
            dimension_semantics=("parallel",)),                  # shards over v7x's 2 TCs
    )(x_flat, w_x, wzb)


# --------------------------------------------------------------------------
# Pass B: tiny serial scan over (T, B):  pz_t = sigmoid(lin_t + w_z * z_{t-1}).
# T is blocked into chunks of TC timesteps per grid step ("arbitrary" axis),
# z carried in VMEM scratch, inner fori_loop (unrolled when short).
# --------------------------------------------------------------------------
def _z_scan_kernel(lin_ref, z0_ref, wzb_ref, o_ref, z_sc):
    # lin_ref: VMEM (TC, B), z0_ref: VMEM (1, B), wzb_ref: SMEM (2,)
    # o_ref  : VMEM (TC, B), z_sc : VMEM (1, B) carried across grid steps
    blk = pl.program_id(0)

    @pl.when(blk == 0)
    def _():
        z_sc[...] = z0_ref[...]

    w_z = wzb_ref[0]                 # hoisted scalar read (outside the loop)
    TC = lin_ref.shape[0]

    def body(t, z):
        pz = jax.nn.sigmoid(lin_ref[pl.ds(t, 1), :] + z * w_z)   # (1, B)
        o_ref[pl.ds(t, 1), :] = pz
        return pz                    # carry z_t = pz_t in registers

    z_final = jax.lax.fori_loop(0, TC, body, z_sc[...], unroll=TC <= 64)
    z_sc[...] = z_final              # hand off to the next T-block


def _z_scan(lin, z0_row, wzb):
    T, B = lin.shape
    TC = T if T <= 512 else 512
    return pl.pallas_call(
        _z_scan_kernel,
        out_shape=jax.ShapeDtypeStruct((T, B), jnp.float32),
        grid=(pl.cdiv(T, TC),),
        in_specs=[
            pl.BlockSpec((TC, B), lambda i: (i, 0)),             # lin chunk
            pl.BlockSpec((1, B), lambda i: (0, 0)),              # z0 resident
            pl.BlockSpec(memory_space=pltpu.MemorySpace.SMEM),   # [w_z, bias]
        ],
        out_specs=pl.BlockSpec((TC, B), lambda i: (i, 0)),
        scratch_shapes=[pltpu.VMEM((1, B), jnp.float32)],        # carried z
        compiler_params=pltpu.CompilerParams(
            dimension_semantics=("arbitrary",)),                 # sequential recurrence
    )(lin, z0_row, wzb)


def zlayer_scan(x_seq, z0, w_x, wzb):
    """Run the cell over a (T, B, D) sequence.

    Structure: a parallel HBM-roofline projection over all (t, b) rows followed
    by a tiny serial scan over (T, B). Per-step math == ZlayerCell.forward with
    the deterministic carry z_t = pz_t.
    """
    T, B, D = x_seq.shape
    lin = _project(x_seq.reshape(T * B, D), w_x, wzb)   # (T*B, 1)  -- heavy pass
    lin = lin.reshape(T, B)                             # free reshape (contiguous)
    pz = _z_scan(lin, z0.reshape(1, B), wzb)            # (T, B)    -- serial, tiny
    return pz.reshape(T, B, 1)


if __name__ == "__main__":
    key = jax.random.PRNGKey(0)
    k_x, k_z, k_w, k_b, k_seq = jax.random.split(key, 5)

    B = 8    # batch
    D = 32   # input_x_dim
    T = 32   # timesteps for the fused-recurrence check

    x_t = jax.random.normal(k_x, (B, D), dtype=jnp.float32)
    z_tm1 = jax.random.normal(k_z, (B, 1), dtype=jnp.float32)
    x_seq = jax.random.normal(k_seq, (T, B, D), dtype=jnp.float32)

    # Deterministic nn.Linear(D+1, 1) init (uniform +/- 1/sqrt(fan_in)).
    bound = 1.0 / jnp.sqrt(jnp.float32(D + 1))
    weight = jax.random.uniform(k_w, (1, D + 1), minval=-bound, maxval=bound,
                                dtype=jnp.float32)
    bias = jax.random.uniform(k_b, (1,), minval=-bound, maxval=bound,
                              dtype=jnp.float32)

    # One-time parameter preprocessing (hoisted out of the hot path).
    w_x, wzb = prepare_zlayer_params(weight, bias)

    # ---- single-step check (exact module forward) ----
    pz = jax.block_until_ready(zlayer_cell(x_t, z_tm1, w_x, wzb))
    xz = jnp.concatenate([x_t, z_tm1], axis=1)
    ref = jax.nn.sigmoid(xz @ weight.T + bias)
    assert pz.shape == (B, 1)
    assert jnp.allclose(pz, ref, atol=1e-5, rtol=1e-5)

    # ---- fused recurrence check (projection + serial scan) ----
    pz_seq = jax.block_until_ready(zlayer_scan(x_seq, z_tm1, w_x, wzb))
    z = z_tm1
    ref_steps = []
    for t in range(T):
        xz_t = jnp.concatenate([x_seq[t], z], axis=1)
        p = jax.nn.sigmoid(xz_t @ weight.T + bias)
        ref_steps.append(p)
        z = p
    ref_seq = jnp.stack(ref_steps, axis=0)
    assert pz_seq.shape == (T, B, 1)
    assert jnp.allclose(pz_seq, ref_seq, atol=1e-5, rtol=1e-5)

    print("KERNEL_OK")
</pallas_src>

<mosaic_0001>
module attributes {stable_mosaic.version = 11 : i64} {
  func.func @_zlayer_cell_kernel(%arg0: i32, %arg1: memref<8x32xf32, #tpu.memory_space<vmem>>, %arg2: memref<8x1xf32, #tpu.memory_space<vmem>>, %arg3: memref<1x32xf32, #tpu.memory_space<vmem>>, %arg4: memref<2xf32, #tpu.memory_space<smem>>, %arg5: memref<8x1xf32, #tpu.memory_space<vmem>>) attributes {dimension_semantics = [#tpu.dimension_semantics<parallel>], iteration_bounds = array<i64: 1>, scalar_prefetch = 0 : i64, scratch_operands = 0 : i64, tpu.core_type = #tpu.core_type<tc>, window_params = [{transform_indices = @transform_0, window_bounds = array<i64: 8, 32>}, {transform_indices = @transform_1, window_bounds = array<i64: 8, 1>}, {pipeline_mode = #tpu.pipeline_mode<synchronous>, transform_indices = @transform_2, window_bounds = array<i64: 1, 32>}, {transform_indices = @transform_3, window_bounds = array<i64: 2>}, {transform_indices = @transform_4, window_bounds = array<i64: 8, 1>}]} {
    %c0 = arith.constant 0 : index
    %c0_0 = arith.constant 0 : index
    %0 = vector.load %arg1[%c0, %c0_0] : memref<8x32xf32, #tpu.memory_space<vmem>>, vector<8x32xf32>
    %c0_1 = arith.constant 0 : index
    %c0_2 = arith.constant 0 : index
    %1 = vector.load %arg3[%c0_1, %c0_2] : memref<1x32xf32, #tpu.memory_space<vmem>>, vector<1x32xf32>
    %2 = vector.broadcast %1 : vector<1x32xf32> to vector<8x32xf32>
    %3 = arith.mulf %0, %2 : vector<8x32xf32>
    %cst = arith.constant dense<0.000000e+00> : vector<8xf32>
    %4 = vector.multi_reduction <add>, %3, %cst [1] : vector<8x32xf32> to vector<8xf32>
    %5 = vector.shape_cast %4 : vector<8xf32> to vector<8x1xf32>
    %c0_3 = arith.constant 0 : index
    %c0_4 = arith.constant 0 : index
    %6 = vector.load %arg2[%c0_3, %c0_4] : memref<8x1xf32, #tpu.memory_space<vmem>>, vector<8x1xf32>
    %c0_5 = arith.constant 0 : index
    %7 = memref.load %arg4[%c0_5] : memref<2xf32, #tpu.memory_space<smem>>
    %8 = vector.broadcast %7 : f32 to vector<8x1xf32>
    %9 = arith.mulf %6, %8 : vector<8x1xf32>
    %10 = arith.addf %5, %9 : vector<8x1xf32>
    %c1 = arith.constant 1 : index
    %11 = memref.load %arg4[%c1] : memref<2xf32, #tpu.memory_space<smem>>
    %12 = vector.broadcast %11 : f32 to vector<8x1xf32>
    %13 = arith.addf %10, %12 : vector<8x1xf32>
    %14 = arith.negf %13 : vector<8x1xf32>
    %15 = math.exp %14 : vector<8x1xf32>
    %cst_6 = arith.constant 1.000000e+00 : f32
    %16 = vector.broadcast %cst_6 : f32 to vector<8x1xf32>
    %17 = arith.addf %16, %15 : vector<8x1xf32>
    %18 = arith.divf %16, %17 : vector<8x1xf32>
    %c0_7 = arith.constant 0 : index
    %c0_8 = arith.constant 0 : index
    %19 = vector.load %arg5[%c0_7, %c0_8] : memref<8x1xf32, #tpu.memory_space<vmem>>, vector<8x1xf32>
    tpu.vector_store %arg5[%c0_7, %c0_8], %18 {strides = array<i32>} : memref<8x1xf32, #tpu.memory_space<vmem>>, vector<8x1xf32>,
    return
  }
  func.func @transform_0(%arg0: i32) -> (i32, i32) {
    %c0_i32 = arith.constant 0 : i32
    %c0_i32_0 = arith.constant 0 : i32
    return %arg0, %c0_i32 : i32, i32
  }
  func.func @transform_1(%arg0: i32) -> (i32, i32) {
    %c0_i32 = arith.constant 0 : i32
    %c0_i32_0 = arith.constant 0 : i32
    return %arg0, %c0_i32 : i32, i32
  }
  func.func @transform_2(%arg0: i32) -> (i32, i32) {
    %c0_i32 = arith.constant 0 : i32
    %c0_i32_0 = arith.constant 0 : i32
    %c0_i32_1 = arith.constant 0 : i32
    return %c0_i32, %c0_i32_0 : i32, i32
  }
  func.func @transform_3(%arg0: i32) -> i32 {
    %c0_i32 = arith.constant 0 : i32
    %c0_i32_0 = arith.constant 0 : i32
    return %c0_i32 : i32
  }
  func.func @transform_4(%arg0: i32) -> (i32, i32) {
    %c0_i32 = arith.constant 0 : i32
    %c0_i32_0 = arith.constant 0 : i32
    return %arg0, %c0_i32 : i32, i32
  }
}

</mosaic_0001>

<bundles_post_ra>
// kernel: tpu_custom_call.1
= control target key start
LH: loop header
LB: loop body
LE: loop exit
PB: predicated region body
PF: predicated region fallthrough
CT: control target
= control target key end

     0   :  { %9 = vsyncpa [#allocation3], 0  ;;  %s127_s0 = inlined_call_operand.vmem [shape: f32[8,32], index: 0, kind: input, shape index: {}]   ;;  %s128_s1 = inlined_call_operand.vmem [shape: f32[8,1], index: 1, kind: input, shape index: {}]   ;;  %s129_s2 = inlined_call_operand.vmem [shape: f32[1,32], index: 2, kind: input, shape index: {}]   ;;  %s130_s3 = inlined_call_operand.vmem [shape: f32[2], index: 3, kind: input, shape index: {}]   ;;  %s131_s4 = inlined_call_operand.vmem [shape: f32[8,1], index: 4, kind: output, shape index: {}]  }
   0x1   :  { %s22_s17 = sshll.u32 %s130_s3, 4  ;;  %s23_s17 = int_to_ptr.vmem [resolvable:$true] %s22_s17 }
   0x2   :  { %s72_s18 = scalar_lea.vmem %s23_s17, 16  ;;  %p77_p1 = scmp.lt.s32.totalorder %s23_s17, %s23_s17 }
   0x3   :  { %p73_p0 = scmp.ne.s32.totalorder %s23_s17, %s72_s18  ;;  %p78_p2 = scmp.lt.s32.totalorder %s72_s18, %s72_s18 }
   0x5   :  { %p79_p3 = por %p78_p2, %p77_p1 }
   0x7   :  { %p80_p4 = pnand %p79_p3, %p73_p0 }
   0x9   :  { %83 = shalt.err (!%p80_p4)
}
   0xa   :  { %s86_s19 = smov [#allocation2]  }
   0xb   :  { %25 = dma.vmem_to_smem %s23_s17, 16, %s86_s19, [#allocation3]  }
   0xc   :  { %84 = dma.done.wait [#allocation3], 16  }
   0xd   :  { %85 = vsyncadd [#allocation3], 4294967280 }
   0xe   :  { %29 = sfence }
   0xf   :  { %v30_v0 = vld [vmem:[%s127_s0] sm:$0xff]  ;;  %vm39_vm0 = vcmask 261120   ;;  %s44_s3 = sld [smem:[#allocation2]]  ;;  %s65_s24 = sld [smem:[#allocation2 + $0x1]]  ;;  %vm57_vm1 = vcmask 7168  }
  0x10   :  { %v64_v1 = vld [vmem:[%s129_s2] ss:$0 sm:$0xff] }
  0x11   :  { %v38_v2 = vmul.f32 %v64_v1, %v30_v0  ;;  %v43_v4 = vld [vmem:[%s128_s1] sm:$0xff] }
  0x13   :  { %v40_v3 = vsel %vm39_vm0, %v38_v2, 0.0 }
  0x14   :  { %41 = vadd.xlane.f32.xlu0 %v40_v3 }
  0x15   :  { %v45_v5 = vstv %s44_s3  ;;  %v49_v8 = vstv %s65_s24 }
  0x16   :  { %v46_v6 = vmul.f32 %v45_v5, %v43_v4 }
  0xa1   :  { %v42_v7 = vpop.xlane.xlu0 %41 }
  0xa2   :  { %v47_v9 = vadd.f32 %v46_v6, %v42_v7 }
  0xa4   :  { %v50_v10 = vadd.f32 %v49_v8, %v47_v9 }
  0xa6   :  { %v66_v11 = vmul.f32 -1.442695, %v50_v10 }
  0xa8   :  { %68 = vpow2.f32 %v66_v11 }
  0xb2   :  { %v69_v12 = vpop.eup %68 }
  0xb3   :  { %v54_v13 = vadd.f32 1.0, %v69_v12 }
  0xb5   :  { %70 = vrcp.f32 %v54_v13 }
  0xbf   :  { %v71_v14 = vpop.eup %70 }
  0xc0   :  { %58 = vst.msk [vmem:[%s131_s4] sm:$0xff] %vm57_vm1, %v71_v14 }
  0xc1   :  { %63 = vsyncpa [#allocation3], 1 }

</bundles_post_ra>
